<compile_context>
chip_gen: v7x
topology: tpu7x:2x2x1
jax: 0.10.0
libtpu: 0.0.40
codegen_flags: <defaults>
</compile_context>

<pallas_src>
import functools

import numpy as np
import jax
import jax.numpy as jnp
from jax import lax
from jax.experimental import pallas as pl
from jax.experimental.pallas import tpu as pltpu

# ---- configuration (small, consistent with the module) --------------------
N, C_IN, H, W = 2, 4, 16, 16      # input NCHW ; input_nc = outer_nc = 4
C_MID = 8                         # inner_input_nc (= inner_output_nc, innermost)
C_OUT = C_IN                      # outer_nc
H2, W2 = H // 2, W // 2
SP, SP2 = H * W, H2 * W2
K1 = 4                            # downconv kernel size
NTAP = 9                          # 3x3 conv taps
EPS = 1e-5
NEG_SLOPE = 0.2

assert N == 2, "the BatchNorm row-pairing in the kernel assumes two images"


# ---------------------------- Pallas kernel --------------------------------
def _unet_innermost_kernel(x_ref, p_ref, wd_ref, ut_ref, wf_ref, mask_ref,
                           g_ref, b_ref, out_ref):
    # Down path: 4x4 stride-2 conv as one K=128 MXU matmul of the
    # block-diagonal-over-batch weight against the im2col patch matrix.
    # (LeakyReLU was applied to the raw input in the wrapper.)
    mid = jnp.dot(wd_ref[...], p_ref[...],
                  preferred_element_type=jnp.float32)          # (N*C_MID, SP2) f32

    # Up path: ReLU, then bilinear x2 upsample (align_corners=True) as one
    # matmul against the per-image kron(Mh, Mw)^T map (f32 for accuracy).
    mid = jnp.maximum(mid, 0.0)
    up = jnp.dot(mid, ut_ref[...],
                 preferred_element_type=jnp.float32)           # (N*C_MID, SP) f32

    # 3x3 pad-1 conv, fully fused: build the (9*N*C_MID, SP) = (144, 256)
    # stack of lane-rolled copies of `up` (XLU rolls, sublane-aligned concat),
    # zero the boundary taps with the precomputed mask, and contract once with
    # the fused (N*C_OUT, 9*N*C_MID) weight on the MXU.
    pieces = []
    for dy in (-1, 0, 1):
        for dx in (-1, 0, 1):
            d = dy * W + dx
            shift = (-d) % SP                       # rolled[:, p] = up[:, (p + d) % SP]
            pieces.append(up if shift == 0 else pltpu.roll(up, shift=shift, axis=1))
    stacked = jnp.concatenate(pieces, axis=0)                  # (144, SP) f32
    stacked = stacked * mask_ref[...]                          # zero-pad boundary taps
    y = jnp.dot(wf_ref[...], stacked,
                preferred_element_type=jnp.float32)            # (N*C_OUT, SP) f32

    # BatchNorm2d, training-mode batch stats (biased variance), single pass:
    # per-row (= per (image, channel)) lane sums, combine the two batch rows
    # of each channel, var = E[y^2] - mean^2.
    row_sum = jnp.sum(y, axis=1, keepdims=True)                # (N*C_OUT, 1)
    row_sq = jnp.sum(y * y, axis=1, keepdims=True)
    half = (N * C_OUT) // 2
    tot = row_sum + jnp.concatenate([row_sum[half:], row_sum[:half]], axis=0)
    sqtot = row_sq + jnp.concatenate([row_sq[half:], row_sq[:half]], axis=0)
    cnt = float(N * H * W)
    mean = tot / cnt
    var = sqtot / cnt - mean * mean
    inv = lax.rsqrt(var + EPS)
    y = (y - mean) * inv * g_ref[...] + b_ref[...]             # (N*C_OUT, SP)

    # Fused skip connection: interleave x rows and y rows per image so the
    # output slab reshapes straight to (N, C_IN+C_OUT, H, W).
    for n in range(N):
        base = n * (C_IN + C_OUT)
        out_ref[base:base + C_IN, :] = x_ref[n * C_IN:(n + 1) * C_IN, :]
        out_ref[base + C_IN:base + C_IN + C_OUT, :] = y[n * C_OUT:(n + 1) * C_OUT, :]


# ------------------------- shape-only constants ------------------------------
def _interp_matrix(out_size, in_size):
    """Bilinear interpolation matrix with align_corners=True, (out, in)."""
    i = np.arange(out_size, dtype=np.float64)
    src = i * (in_size - 1) / (out_size - 1)
    i0 = np.floor(src).astype(np.int64)
    i1 = np.minimum(i0 + 1, in_size - 1)
    frac = src - i0
    m = np.zeros((out_size, in_size), dtype=np.float64)
    m[np.arange(out_size), i0] += 1.0 - frac
    m[np.arange(out_size), i1] += frac
    return m


@functools.lru_cache(maxsize=None)
def _upsample_map():
    """Per-image fused upsample map kron(Mh, Mw)^T, (SP2, SP); built once."""
    mh = _interp_matrix(H, H2)
    mw = _interp_matrix(W, W2)
    ut = np.kron(mh, mw).T.astype(np.float32)        # (SP2, SP) = (64, 256)
    return jnp.asarray(ut, dtype=jnp.float32)


@functools.lru_cache(maxsize=None)
def _tap_masks():
    """Boundary masks for the 9 conv taps, repeated per stacked row: (144, SP) f32."""
    yy, xx = np.meshgrid(np.arange(H), np.arange(W), indexing='ij')
    yy = yy.reshape(-1)
    xx = xx.reshape(-1)
    rows = []
    for dy in (-1, 0, 1):
        for dx in (-1, 0, 1):
            valid = ((yy + dy >= 0) & (yy + dy < H)
                     & (xx + dx >= 0) & (xx + dx < W))
            rows.append(valid.astype(np.float32))
    m = np.stack(rows, axis=0)                       # (9, SP), tap-major
    m = np.repeat(m, N * C_MID, axis=0)              # (9*N*C_MID, SP) = (144, 256)
    return jnp.asarray(m, dtype=jnp.float32)


def prepare_params(wd, wu, gamma, beta):
    """One-time host-side repacking of module parameters into kernel operands."""
    wd = np.asarray(wd, np.float32)
    wu = np.asarray(wu, np.float32)
    gamma = np.asarray(gamma, np.float32)
    beta = np.asarray(beta, np.float32)
    eye_n = np.eye(N, dtype=np.float32)

    # Block-diagonal (over batch) downconv weight: (N*C_MID, N*16*C_IN) = (16, 128)
    wd_mat = np.transpose(wd, (0, 2, 3, 1)).reshape(C_MID, K1 * K1 * C_IN)
    wd_bd = np.einsum('ab,ij->aibj', eye_n, wd_mat)
    wd_bd = wd_bd.reshape(N * C_MID, N * K1 * K1 * C_IN)

    # Fused per-tap block-diagonal 3x3 conv weight: (N*C_OUT, 9*N*C_MID) = (8, 144),
    # K ordered tap-major then (image, channel) — matching the in-kernel stack.
    wu_taps = np.transpose(wu, (2, 3, 0, 1)).reshape(NTAP, C_OUT, C_MID)
    wu_bd = np.einsum('ab,tij->taibj', eye_n, wu_taps)
    wu_bd = wu_bd.reshape(NTAP, N * C_OUT, N * C_MID)
    wfused = np.transpose(wu_bd, (1, 0, 2)).reshape(N * C_OUT, NTAP * N * C_MID)

    # BN affine parameters, one row per (image, channel): (N*C_OUT, 1)
    g_rows = np.tile(gamma, N).reshape(N * C_OUT, 1)
    b_rows = np.tile(beta, N).reshape(N * C_OUT, 1)

    return {
        'wd_bd': jnp.asarray(wd_bd, jnp.bfloat16),
        'wfused': jnp.asarray(wfused, jnp.float32),
        'ut': _upsample_map(),
        'mask': _tap_masks(),
        'g_rows': jnp.asarray(g_rows, jnp.float32),
        'b_rows': jnp.asarray(b_rows, jnp.float32),
    }


# ------------------------------- forward ------------------------------------
@jax.jit
def unet_block_forward(x_nchw, packed):
    x = x_nchw.astype(jnp.float32)

    # LeakyReLU on the raw input (before im2col; LeakyReLU(0)=0 so padding is safe).
    xr = jnp.where(x >= 0.0, x, NEG_SLOPE * x)

    # im2col for the 4x4 stride-2 pad-1 conv: rows (n, ky, kx, ci), cols (oy, ox).
    # (Kept in the wrapper: XLA fuses the pad + strided slices; moving it
    #  in-kernel would require either a lane-strided gather or 16 extra taps.)
    xpad = jnp.pad(xr, ((0, 0), (0, 0), (1, 1), (1, 1)))
    patches = [xpad[:, :, ky:ky + 2 * H2:2, kx:kx + 2 * W2:2]
               for ky in range(K1) for kx in range(K1)]            # each (N,C,H2,W2)
    p = jnp.stack(patches, axis=1)                                 # (N,16,C_IN,H2,W2)
    p = p.reshape(N * K1 * K1 * C_IN, SP2).astype(jnp.bfloat16)    # (128, 64)

    # Raw input rows for the in-kernel skip copy: (N*C_IN, SP) = (8, 256)
    x_rows = x.reshape(N * C_IN, SP)

    out_rows = pl.pallas_call(
        _unet_innermost_kernel,
        out_shape=jax.ShapeDtypeStruct((N * (C_IN + C_OUT), SP), jnp.float32),
    )(x_rows, p, packed['wd_bd'], packed['ut'], packed['wfused'],
      packed['mask'], packed['g_rows'], packed['b_rows'])

    # rows are (n, channel) with x channels first per image -> NCHW directly.
    return out_rows.reshape(N, C_IN + C_OUT, H, W)


# ---------------------- pure-JAX reference (for checking) -------------------
def reference_forward(x_nchw, params):
    wd, wu, gamma, beta = params
    hi = lax.Precision.HIGHEST
    x = x_nchw.astype(jnp.float32)
    y = jnp.where(x >= 0.0, x, NEG_SLOPE * x)
    y = lax.conv_general_dilated(y, wd, (2, 2), ((1, 1), (1, 1)),
                                 dimension_numbers=('NCHW', 'OIHW', 'NCHW'),
                                 precision=hi)
    y = jnp.maximum(y, 0.0)
    mh = jnp.asarray(_interp_matrix(H, H2), jnp.float32)
    mw = jnp.asarray(_interp_matrix(W, W2), jnp.float32)
    y = jnp.einsum('hi,ncij->nchj', mh, y, precision=hi)
    y = jnp.einsum('wj,nchj->nchw', mw, y, precision=hi)
    y = lax.conv_general_dilated(y, wu, (1, 1), ((1, 1), (1, 1)),
                                 dimension_numbers=('NCHW', 'OIHW', 'NCHW'),
                                 precision=hi)
    mean = jnp.mean(y, axis=(0, 2, 3), keepdims=True)
    var = jnp.mean((y - mean) ** 2, axis=(0, 2, 3), keepdims=True)
    y = (y - mean) * lax.rsqrt(var + EPS)
    y = y * gamma.reshape(1, -1, 1, 1) + beta.reshape(1, -1, 1, 1)
    return jnp.concatenate([x, y], axis=1)


if __name__ == "__main__":
    key = jax.random.PRNGKey(0)
    k1, k2, k3, k4, k5 = jax.random.split(key, 5)
    x = jax.random.normal(k1, (N, C_IN, H, W), jnp.float32)
    wd = 0.2 * jax.random.normal(k2, (C_MID, C_IN, K1, K1), jnp.float32)
    wu = 0.2 * jax.random.normal(k3, (C_OUT, C_MID, 3, 3), jnp.float32)
    gamma = 1.0 + 0.1 * jax.random.normal(k4, (C_OUT,), jnp.float32)
    beta = 0.1 * jax.random.normal(k5, (C_OUT,), jnp.float32)

    packed = prepare_params(wd, wu, gamma, beta)     # one-time weight repack

    out = jax.block_until_ready(unet_block_forward(x, packed))
    ref = jax.block_until_ready(reference_forward(x, (wd, wu, gamma, beta)))

    assert out.shape == (N, C_IN + C_OUT, H, W), out.shape
    max_err = float(jnp.max(jnp.abs(out - ref)))
    if not bool(jnp.allclose(out, ref, atol=2e-2, rtol=2e-2)):
        raise AssertionError(f"kernel/reference mismatch, max abs err = {max_err}")
    print("KERNEL_OK")
</pallas_src>

<mosaic_0001>
module attributes {stable_mosaic.version = 11 : i64} {
  func.func @_unet_innermost_kernel(%arg0: memref<8x256xf32, #tpu.memory_space<vmem>>, %arg1: memref<128x64xbf16, #tpu.memory_space<vmem>>, %arg2: memref<16x128xbf16, #tpu.memory_space<vmem>>, %arg3: memref<64x256xf32, #tpu.memory_space<vmem>>, %arg4: memref<8x144xf32, #tpu.memory_space<vmem>>, %arg5: memref<144x256xf32, #tpu.memory_space<vmem>>, %arg6: memref<8x1xf32, #tpu.memory_space<vmem>>, %arg7: memref<8x1xf32, #tpu.memory_space<vmem>>, %arg8: memref<16x256xf32, #tpu.memory_space<vmem>>) attributes {dimension_semantics = [], scalar_prefetch = 0 : i64, scratch_operands = 0 : i64, tpu.core_type = #tpu.core_type<tc>} {
    %c0 = arith.constant 0 : index
    %c0_0 = arith.constant 0 : index
    %0 = vector.load %arg2[%c0, %c0_0] : memref<16x128xbf16, #tpu.memory_space<vmem>>, vector<16x128xbf16>
    %c0_1 = arith.constant 0 : index
    %c0_2 = arith.constant 0 : index
    %1 = vector.load %arg1[%c0_1, %c0_2] : memref<128x64xbf16, #tpu.memory_space<vmem>>, vector<128x64xbf16>
    %cst = arith.constant dense<0.000000e+00> : vector<16x64xf32>
    %2 = tpu.matmul %0, %1, %cst {dimension_numbers = #tpu.dot_dimension_numbers<[1], [0], [0], [1], [0, 0, 1, 1], [], []>} : vector<16x128xbf16>, vector<128x64xbf16>, vector<16x64xf32> -> vector<16x64xf32>
    %cst_3 = arith.constant 0.000000e+00 : f32
    %3 = vector.broadcast %cst_3 : f32 to vector<16x64xf32>
    %4 = arith.maximumf %2, %3 : vector<16x64xf32>
    %c0_4 = arith.constant 0 : index
    %c0_5 = arith.constant 0 : index
    %5 = vector.load %arg3[%c0_4, %c0_5] : memref<64x256xf32, #tpu.memory_space<vmem>>, vector<64x256xf32>
    %cst_6 = arith.constant dense<0.000000e+00> : vector<16x256xf32>
    %6 = tpu.matmul %4, %5, %cst_6 {dimension_numbers = #tpu.dot_dimension_numbers<[1], [0], [0], [1], [0, 0, 1, 1], [], []>} : vector<16x64xf32>, vector<64x256xf32>, vector<16x256xf32> -> vector<16x256xf32>
    %c17_i32 = arith.constant 17 : i32
    %7 = tpu.dynamic_rotate %6 by %c17_i32 dim 1 : vector<16x256xf32>, i32 -> vector<16x256xf32>
    %c16_i32 = arith.constant 16 : i32
    %8 = tpu.dynamic_rotate %6 by %c16_i32 dim 1 : vector<16x256xf32>, i32 -> vector<16x256xf32>
    %c15_i32 = arith.constant 15 : i32
    %9 = tpu.dynamic_rotate %6 by %c15_i32 dim 1 : vector<16x256xf32>, i32 -> vector<16x256xf32>
    %c1_i32 = arith.constant 1 : i32
    %10 = tpu.dynamic_rotate %6 by %c1_i32 dim 1 : vector<16x256xf32>, i32 -> vector<16x256xf32>
    %c255_i32 = arith.constant 255 : i32
    %11 = tpu.dynamic_rotate %6 by %c255_i32 dim 1 : vector<16x256xf32>, i32 -> vector<16x256xf32>
    %c241_i32 = arith.constant 241 : i32
    %12 = tpu.dynamic_rotate %6 by %c241_i32 dim 1 : vector<16x256xf32>, i32 -> vector<16x256xf32>
    %c240_i32 = arith.constant 240 : i32
    %13 = tpu.dynamic_rotate %6 by %c240_i32 dim 1 : vector<16x256xf32>, i32 -> vector<16x256xf32>
    %c239_i32 = arith.constant 239 : i32
    %14 = tpu.dynamic_rotate %6 by %c239_i32 dim 1 : vector<16x256xf32>, i32 -> vector<16x256xf32>
    %15 = tpu.concatenate %7, %8, %9, %10, %6, %11, %12, %13, %14 in 0 : vector<16x256xf32>, vector<16x256xf32>, vector<16x256xf32>, vector<16x256xf32>, vector<16x256xf32>, vector<16x256xf32>, vector<16x256xf32>, vector<16x256xf32>, vector<16x256xf32> -> vector<144x256xf32>
    %c0_7 = arith.constant 0 : index
    %c0_8 = arith.constant 0 : index
    %16 = vector.load %arg5[%c0_7, %c0_8] : memref<144x256xf32, #tpu.memory_space<vmem>>, vector<144x256xf32>
    %17 = arith.mulf %15, %16 : vector<144x256xf32>
    %c0_9 = arith.constant 0 : index
    %c0_10 = arith.constant 0 : index
    %18 = vector.load %arg4[%c0_9, %c0_10] : memref<8x144xf32, #tpu.memory_space<vmem>>, vector<8x144xf32>
    %cst_11 = arith.constant dense<0.000000e+00> : vector<8x256xf32>
    %19 = tpu.matmul %18, %17, %cst_11 {dimension_numbers = #tpu.dot_dimension_numbers<[1], [0], [0], [1], [0, 0, 1, 1], [], []>} : vector<8x144xf32>, vector<144x256xf32>, vector<8x256xf32> -> vector<8x256xf32>
    %cst_12 = arith.constant dense<0.000000e+00> : vector<8xf32>
    %20 = vector.multi_reduction <add>, %19, %cst_12 [1] : vector<8x256xf32> to vector<8xf32>
    %21 = vector.shape_cast %20 : vector<8xf32> to vector<8x1xf32>
    %22 = arith.mulf %19, %19 : vector<8x256xf32>
    %cst_13 = arith.constant dense<0.000000e+00> : vector<8xf32>
    %23 = vector.multi_reduction <add>, %22, %cst_13 [1] : vector<8x256xf32> to vector<8xf32>
    %24 = vector.shape_cast %23 : vector<8xf32> to vector<8x1xf32>
    %25 = vector.extract_strided_slice %21 {offsets = [4, 0], sizes = [4, 1], strides = [1, 1]} : vector<8x1xf32> to vector<4x1xf32>
    %26 = vector.extract_strided_slice %21 {offsets = [0, 0], sizes = [4, 1], strides = [1, 1]} : vector<8x1xf32> to vector<4x1xf32>
    %27 = tpu.concatenate %25, %26 in 0 : vector<4x1xf32>, vector<4x1xf32> -> vector<8x1xf32>
    %28 = arith.addf %21, %27 : vector<8x1xf32>
    %29 = vector.extract_strided_slice %24 {offsets = [4, 0], sizes = [4, 1], strides = [1, 1]} : vector<8x1xf32> to vector<4x1xf32>
    %30 = vector.extract_strided_slice %24 {offsets = [0, 0], sizes = [4, 1], strides = [1, 1]} : vector<8x1xf32> to vector<4x1xf32>
    %31 = tpu.concatenate %29, %30 in 0 : vector<4x1xf32>, vector<4x1xf32> -> vector<8x1xf32>
    %32 = arith.addf %24, %31 : vector<8x1xf32>
    %cst_14 = arith.constant 5.120000e+02 : f32
    %33 = vector.broadcast %cst_14 : f32 to vector<8x1xf32>
    %34 = arith.divf %28, %33 : vector<8x1xf32>
    %cst_15 = arith.constant 5.120000e+02 : f32
    %35 = vector.broadcast %cst_15 : f32 to vector<8x1xf32>
    %36 = arith.divf %32, %35 : vector<8x1xf32>
    %37 = arith.mulf %34, %34 : vector<8x1xf32>
    %38 = arith.subf %36, %37 : vector<8x1xf32>
    %cst_16 = arith.constant 9.99999974E-6 : f32
    %39 = vector.broadcast %cst_16 : f32 to vector<8x1xf32>
    %40 = arith.addf %38, %39 : vector<8x1xf32>
    %41 = math.rsqrt %40 : vector<8x1xf32>
    %42 = vector.broadcast %34 : vector<8x1xf32> to vector<8x256xf32>
    %43 = arith.subf %19, %42 : vector<8x256xf32>
    %44 = vector.broadcast %41 : vector<8x1xf32> to vector<8x256xf32>
    %45 = arith.mulf %43, %44 : vector<8x256xf32>
    %c0_17 = arith.constant 0 : index
    %c0_18 = arith.constant 0 : index
    %46 = vector.load %arg6[%c0_17, %c0_18] : memref<8x1xf32, #tpu.memory_space<vmem>>, vector<8x1xf32>
    %47 = vector.broadcast %46 : vector<8x1xf32> to vector<8x256xf32>
    %48 = arith.mulf %45, %47 : vector<8x256xf32>
    %c0_19 = arith.constant 0 : index
    %c0_20 = arith.constant 0 : index
    %49 = vector.load %arg7[%c0_19, %c0_20] : memref<8x1xf32, #tpu.memory_space<vmem>>, vector<8x1xf32>
    %50 = vector.broadcast %49 : vector<8x1xf32> to vector<8x256xf32>
    %51 = arith.addf %48, %50 : vector<8x256xf32>
    %c0_21 = arith.constant 0 : index
    %c0_22 = arith.constant 0 : index
    %52 = vector.load %arg0[%c0_21, %c0_22] : memref<8x256xf32, #tpu.memory_space<vmem>>, vector<4x256xf32>
    %c0_23 = arith.constant 0 : index
    %c0_24 = arith.constant 0 : index
    %53 = vector.load %arg8[%c0_23, %c0_24] : memref<16x256xf32, #tpu.memory_space<vmem>>, vector<4x256xf32>
    tpu.vector_store %arg8[%c0_23, %c0_24], %52 {strides = array<i32>} : memref<16x256xf32, #tpu.memory_space<vmem>>, vector<4x256xf32>,
    %54 = vector.extract_strided_slice %51 {offsets = [0, 0], sizes = [4, 256], strides = [1, 1]} : vector<8x256xf32> to vector<4x256xf32>
    %c4 = arith.constant 4 : index
    %c0_25 = arith.constant 0 : index
    %55 = vector.load %arg8[%c4, %c0_25] : memref<16x256xf32, #tpu.memory_space<vmem>>, vector<4x256xf32>
    tpu.vector_store %arg8[%c4, %c0_25], %54 {strides = array<i32>} : memref<16x256xf32, #tpu.memory_space<vmem>>, vector<4x256xf32>,
    %c4_26 = arith.constant 4 : index
    %c0_27 = arith.constant 0 : index
    %56 = vector.load %arg0[%c4_26, %c0_27] : memref<8x256xf32, #tpu.memory_space<vmem>>, vector<4x256xf32>
    %c8 = arith.constant 8 : index
    %c0_28 = arith.constant 0 : index
    %57 = vector.load %arg8[%c8, %c0_28] : memref<16x256xf32, #tpu.memory_space<vmem>>, vector<4x256xf32>
    tpu.vector_store %arg8[%c8, %c0_28], %56 {strides = array<i32>} : memref<16x256xf32, #tpu.memory_space<vmem>>, vector<4x256xf32>,
    %58 = vector.extract_strided_slice %51 {offsets = [4, 0], sizes = [4, 256], strides = [1, 1]} : vector<8x256xf32> to vector<4x256xf32>
    %c12 = arith.constant 12 : index
    %c0_29 = arith.constant 0 : index
    %59 = vector.load %arg8[%c12, %c0_29] : memref<16x256xf32, #tpu.memory_space<vmem>>, vector<4x256xf32>
    tpu.vector_store %arg8[%c12, %c0_29], %58 {strides = array<i32>} : memref<16x256xf32, #tpu.memory_space<vmem>>, vector<4x256xf32>,
    return
  }
}

</mosaic_0001>

<bundles_post_ra>
// kernel: unet_block_forward.1
= control target key start
LH: loop header
LB: loop body
LE: loop exit
PB: predicated region body
PF: predicated region fallthrough
CT: control target
= control target key end

     0   :  { %v701_v0 = vmov 0.0   ;;  %vm702_vm0 = vmmov 0   ;;  %vm161_vm1 = vcmask 523264   ;;  %s704_s17 = smov 16   ;;  %s705_s18 = smov 15   ;;  %vm425_vm2 = vcmask 130048   ;;  %s1111_s1 = inlined_call_operand.vmem [shape: bf16[128,64], index: 1, kind: input, shape index: {}]   ;;  %s1112_s3 = inlined_call_operand.vmem [shape: f32[64,256], index: 3, kind: input, shape index: {}]   ;;  %s1113_s2 = inlined_call_operand.vmem [shape: bf16[16,128], index: 2, kind: input, shape index: {}]   ;;  %s1114_s5 = inlined_call_operand.vmem [shape: f32[144,256], index: 5, kind: input, shape index: {}]   ;;  %s1115_s4 = inlined_call_operand.vmem [shape: f32[8,144], index: 4, kind: input, shape index: {}]   ;;  %s1116_s6 = inlined_call_operand.vmem [shape: f32[8,1], index: 6, kind: input, shape index: {}]   ;;  %s1117_s7 = inlined_call_operand.vmem [shape: f32[8,1], index: 7, kind: input, shape index: {}]   ;;  %s1118_s0 = inlined_call_operand.vmem [shape: f32[8,256], index: 0, kind: input, shape index: {}]   ;;  %s1119_s8 = inlined_call_operand.vmem [shape: f32[16,256], index: 8, kind: output, shape index: {}]  }
   0x1   :  { %605 = vmatprep.subr.bf16.mxu0 %v701_v0  ;;  %v690_v1 = vld [vmem:[%s1111_s1] sm:$0xff]   ;;  %621 = vmatprep.mubr.msk.bf16.mxu0 %vm702_vm0, %v701_v0  ;;  %v691_v2 = vld [vmem:[%s1111_s1 + $0x8] sm:$0xff]   ;;  %v692_v3 = vld [vmem:[%s1111_s1 + $0x10] sm:$0xff]   ;;  %s706_s19 = smov 1   ;;  %s707_s20 = smov 127  }
   0x2   :  { %232 = vmatprep.mubr.f32.mxu1 %v701_v0  ;;  %606 = vmatpush3.bf16.msra.mxu0 %v690_v1  ;;  %v693_v4 = vld [vmem:[%s1111_s1 + $0x18] sm:$0xff]   ;;  %v146_v5 = vld [vmem:[%s1112_s3 + $0x8] sm:$0xff]  ;;  %v145_v7 = vld [vmem:[%s1112_s3] sm:$0xff]  ;;  %s708_s21 = smov 113   ;;  %s709_s22 = smov 112  }
   0x3   :  { %607 = vmatprep.subr.bf16.mxu0 %v701_v0  ;;  %v148_v6 = vld [vmem:[%s1112_s3 + $0x18] sm:$0xff]  ;;  %v147_v9 = vld [vmem:[%s1112_s3 + $0x10] sm:$0xff]  ;;  %v150_v10 = vld [vmem:[%s1112_s3 + $0x28] sm:$0xff]  ;;  %s710_s23 = smov 111  }
   0x4   :  { %v625_v8 = vpack.c.bf16 %v148_v6, %v146_v5  ;;  %v152_v11 = vld [vmem:[%s1112_s3 + $0x38] sm:$0xff]  ;;  %v627_v12 = vpack.c.bf16 %v147_v9, %v145_v7  ;;  %v149_v14 = vld [vmem:[%s1112_s3 + $0x20] sm:$0xff]  ;;  %v151_v15 = vld [vmem:[%s1112_s3 + $0x30] sm:$0xff] }
   0x5   :  { %v629_v13 = vpack.c.bf16 %v152_v11, %v150_v10  ;;  %v154_v16 = vld [vmem:[%s1112_s3 + $0x48] sm:$0xff]  ;;  %v156_v17 = vld [vmem:[%s1112_s3 + $0x58] sm:$0xff]  ;;  %v631_v18 = vpack.c.bf16 %v151_v15, %v149_v14  ;;  %v694_v19 = vld [vmem:[%s1111_s1 + $0x20] sm:$0xff]  }
   0x6   :  { %608 = vmatpush3.bf16.msra.mxu0 %v691_v2  ;;  %626 = vmatprep.subr.bf16.mxu1 %v625_v8  ;;  %v633_v20 = vpack.c.bf16 %v156_v17, %v154_v16  ;;  %v153_v21 = vld [vmem:[%s1112_s3 + $0x40] sm:$0xff]  ;;  %v155_v22 = vld [vmem:[%s1112_s3 + $0x50] sm:$0xff]  ;;  %v158_v23 = vld [vmem:[%s1112_s3 + $0x68] sm:$0xff] }
   0x7   :  { %609 = vmatprep.subr.bf16.mxu0 %v701_v0  ;;  %628 = vmatpush1.bf16.msra.mxu1 %v627_v12  ;;  %v160_v24 = vld [vmem:[%s1112_s3 + $0x78] sm:$0xff]  ;;  %v635_v25 = vpack.c.bf16 %v155_v22, %v153_v21  ;;  %v695_v26 = vld [vmem:[%s1111_s1 + $0x28] sm:$0xff]   ;;  %v696_v28 = vld [vmem:[%s1111_s1 + $0x30] sm:$0xff]  }
   0x8   :  { %630 = vmatprep.subr.bf16.mxu1 %v629_v13  ;;  %v637_v27 = vpack.c.bf16 %v160_v24, %v158_v23  ;;  %v697_v29 = vld [vmem:[%s1111_s1 + $0x38] sm:$0xff]   ;;  %v698_v30 = vld [vmem:[%s1113_s2] sm:$0xff]   ;;  %v159_v32 = vld [vmem:[%s1112_s3 + $0x70] sm:$0xff]  ;;  %s703_s1 = smov 17  }
   0x9   :  { %v157_v31 = vld [vmem:[%s1112_s3 + $0x60] sm:$0xff]  ;;  %v369_v43 = vld [vmem:[%s1114_s5 + $0x90] sm:$0xff]  ;;  %v368_v44 = vld [vmem:[%s1114_s5 + $0x88] sm:$0xff] }
   0xa   :  { %610 = vmatpush3.bf16.msra.mxu0 %v692_v3  ;;  %v639_v33 = vpack.c.bf16 %v159_v32, %v157_v31  ;;  %v367_v42 = vld [vmem:[%s1114_s5 + $0x80] sm:$0xff]  ;;  %v370_v45 = vld [vmem:[%s1114_s5 + $0x98] sm:$0xff]  ;;  %v424_v54 = vld [vmem:[%s1115_s4 + $0x8] sm:$0xff] }
   0xb   :  { %611 = vmatprep.subr.bf16.mxu0 %v701_v0  ;;  %632 = vmatpush1.bf16.msra.mxu1 %v631_v18  ;;  %v351_v7 = vld [vmem:[%s1114_s5] sm:$0xff]  ;;  %v352_v8 = vld [vmem:[%s1114_s5 + $0x8] sm:$0xff]  ;;  %v353_v12 = vld [vmem:[%s1114_s5 + $0x10] sm:$0xff] }
   0xc   :  { %634 = vmatprep.subr.bf16.mxu1 %v633_v20  ;;  %v354_v13 = vld [vmem:[%s1114_s5 + $0x18] sm:$0xff]  ;;  %v356_v22 = vld [vmem:[%s1114_s5 + $0x28] sm:$0xff] }
   0xe   :  { %612 = vmatpush3.bf16.msra.mxu0 %v693_v4 }
   0xf   :  { %613 = vmatprep.subr.bf16.mxu0 %v701_v0  ;;  %636 = vmatpush1.bf16.msra.mxu1 %v635_v25 }
  0x10   :  { %638 = vmatprep.subr.bf16.mxu1 %v637_v27  ;;  %v358_v27 = vld [vmem:[%s1114_s5 + $0x38] sm:$0xff] }
  0x12   :  { %614 = vmatpush3.bf16.msra.mxu0 %v694_v19  ;;  %v355_v19 = vld [vmem:[%s1114_s5 + $0x20] sm:$0xff] }
  0x13   :  { %615 = vmatprep.subr.bf16.mxu0 %v701_v0  ;;  %640 = vmatpush1.bf16.msra.mxu1 %v639_v33 }
  0x16   :  { %616 = vmatpush3.bf16.msra.mxu0 %v695_v26  ;;  %v357_v26 = vld [vmem:[%s1114_s5 + $0x30] sm:$0xff] }
  0x17   :  { %617 = vmatprep.subr.bf16.mxu0 %v701_v0 }
  0x1a   :  { %618 = vmatpush3.bf16.msra.mxu0 %v696_v28 }
  0x1b   :  { %619 = vmatprep.subr.bf16.mxu0 %v701_v0 }
  0x1e   :  { %620 = vmatpush3.bf16.msra.mxu0 %v697_v29 }
  0x21   :  { %622 = vmatmul.mubr.bf16.vlgmr.msra.gmra.mrb[0].mxu0 %v698_v30 }
  0xf4   :  { %v136_v34 = vpop.f32.mrb[0].mxu0 }
  0xf5   :  { %v143_v35 = vmax.f32 %v136_v34, 0.0  ;;  %v623_v36 = vpop.f32.mrb[1].mxu0 }
  0xf6   :  { %v139_v37 = vpop.f32.mrb[2].mxu0 }
  0xf7   :  { %v624_v38 = vpop.f32.mrb[3].mxu0  ;;  %593 = vmatmul.mubr.msk.f32.vlgmr.msra.gmra.mrb[0].mxu1 %vm161_vm1, %v143_v35  ;;  %v144_v39 = vmax.f32 %v139_v37, 0.0  ;;  %v359_v35 = vld [vmem:[%s1114_s5 + $0x40] sm:$0xff] }
  0xf8   :  { %238 = vmatprep.mubr.f32.mxu1 %v701_v0  ;;  %v253_v0 = vlaneseq  ;;  %v360_v38 = vld [vmem:[%s1114_s5 + $0x48] sm:$0xff] }
  0xfa   :  { %v880_v3 = vand.u32 127, %v253_v0 }
  0xfb   :  { %594 = vmatmul.mubr.msk.f32.gmra.mrb[2].mxu1 %vm161_vm1, %v144_v39 }
  0xfc   :  { %595 = vmatprep.mubr.msk.f32.mxu1 %vm425_vm2, %v424_v54  ;;  %vm255_vm3 = vcmp.lt.s32.totalorder %v880_v3, 17  ;;  %vm268_vm4 = vcmp.lt.s32.totalorder %v880_v3, 16  ;;  %vm281_vm5 = vcmp.lt.s32.totalorder %v880_v3, 15  ;;  %vm294_vm6 = vcmp.lt.s32.totalorder %v880_v3, 1 }
  0xfd   :  { %vm307_vm7 = vcmp.lt.s32.totalorder %v880_v3, 127  ;;  %vm320_vm8 = vcmp.lt.s32.totalorder %v880_v3, 113  ;;  %vm333_vm9 = vcmp.lt.s32.totalorder %v880_v3, 112  ;;  %vm346_vm10 = vcmp.lt.s32.totalorder %v880_v3, 111 }
 0x1ca   :  { %v234_v40 = vpop.f32.mrb[0].mxu1 }
 0x1cb   :  { %245 = vrot.lane.b32.xlu0 %v234_v40, %s703_s1  ;;  %v236_v41 = vpop.f32.mrb[1].mxu1  ;;  %v857_v48 = vmul.f32 %v367_v42, %v234_v40  ;;  %v361_v42 = vld [vmem:[%s1114_s5 + $0x50] sm:$0xff] }
 0x1cc   :  { %249 = vrot.lane.b32.xlu1 %v236_v41, %s703_s1  ;;  %v861_v50 = vmul.f32 %v368_v44, %v236_v41 }
 0x1ce   :  { %v240_v46 = vpop.f32.mrb[2].mxu1 }
 0x1cf   :  { %260 = vrot.lane.b32.xlu0 %v234_v40, %s704_s17  ;;  %v242_v47 = vpop.f32.mrb[3].mxu1  ;;  %v859_v49 = vmul.f32 %v369_v43, %v240_v46  ;;  %v362_v43 = vld [vmem:[%s1114_s5 + $0x58] sm:$0xff] }
 0x1d0   :  { %262 = vrot.lane.b32.xlu1 %v240_v46, %s704_s17  ;;  %v863_v51 = vmul.f32 %v370_v45, %v242_v47 }
 0x1d1   :  { %v659_v52 = vpack.c.bf16 %v859_v49, %v857_v48 }
 0x1d2   :  { %v657_v53 = vpack.c.bf16 %v863_v51, %v861_v50  ;;  %v376_v50 = vld [vmem:[%s1114_s5 + $0xc8] sm:$0xff] }
 0x1d3   :  { %273 = vrot.lane.b32.xlu0 %v234_v40, %s705_s18 }
 0x1d4   :  { %275 = vrot.lane.b32.xlu1 %v240_v46, %s705_s18 }
 0x1d7   :  { %286 = vrot.lane.b32.xlu0 %v234_v40, %s706_s19 }
 0x1d8   :  { %288 = vrot.lane.b32.xlu1 %v240_v46, %s706_s19 }
 0x1db   :  { %264 = vrot.lane.b32.xlu0 %v236_v41, %s704_s17 }
 0x1dc   :  { %301 = vrot.lane.b32.xlu1 %v240_v46, %s707_s20 }
 0x1df   :  { %277 = vrot.lane.b32.xlu0 %v236_v41, %s705_s18 }
 0x1e0   :  { %314 = vrot.lane.b32.xlu1 %v240_v46, %s708_s21 }
 0x1e3   :  { %290 = vrot.lane.b32.xlu0 %v236_v41, %s706_s19 }
 0x1e4   :  { %327 = vrot.lane.b32.xlu1 %v240_v46, %s709_s22 }
 0x1e7   :  { %247 = vrot.lane.b32.xlu0 %v240_v46, %s703_s1 }
 0x1e8   :  { %251 = vrot.lane.b32.xlu1 %v242_v47, %s703_s1 }
 0x1eb   :  { %299 = vrot.lane.b32.xlu0 %v234_v40, %s707_s20 }
 0x1ec   :  { %266 = vrot.lane.b32.xlu1 %v242_v47, %s704_s17 }
 0x1ef   :  { %303 = vrot.lane.b32.xlu0 %v236_v41, %s707_s20 }
 0x1f0   :  { %279 = vrot.lane.b32.xlu1 %v242_v47, %s705_s18 }
 0x1f3   :  { %312 = vrot.lane.b32.xlu0 %v234_v40, %s708_s21 }
 0x1f4   :  { %292 = vrot.lane.b32.xlu1 %v242_v47, %s706_s19 }
 0x1f7   :  { %316 = vrot.lane.b32.xlu0 %v236_v41, %s708_s21 }
 0x1f8   :  { %340 = vrot.lane.b32.xlu1 %v240_v46, %s710_s23 }
 0x1fb   :  { %325 = vrot.lane.b32.xlu0 %v234_v40, %s709_s22 }
 0x1fc   :  { %305 = vrot.lane.b32.xlu1 %v242_v47, %s707_s20 }
 0x1ff   :  { %329 = vrot.lane.b32.xlu0 %v236_v41, %s709_s22 }
 0x200   :  { %318 = vrot.lane.b32.xlu1 %v242_v47, %s708_s21 }
 0x203   :  { %338 = vrot.lane.b32.xlu0 %v234_v40, %s710_s23 }
 0x204   :  { %331 = vrot.lane.b32.xlu1 %v242_v47, %s709_s22 }
 0x207   :  { %342 = vrot.lane.b32.xlu0 %v236_v41, %s710_s23 }
 0x208   :  { %344 = vrot.lane.b32.xlu1 %v242_v47, %s710_s23 }
 0x23d   :  { %v246_v55 = vpop.permute.xlu0 %245 }
 0x23e   :  { %v250_v56 = vpop.permute.xlu1 %249 }
 0x23f   :  { %v256_v9 = vsel %vm255_vm3, %v246_v55, %v250_v56  ;;  %v258_v10 = vsel %vm255_vm3, %v250_v56, %v246_v55 }
 0x240   :  { %v387_v17 = vmul.f32 %v351_v7, %v258_v10  ;;  %v388_v18 = vmul.f32 %v352_v8, %v256_v9  ;;  %v365_v7 = vld [vmem:[%s1114_s5 + $0x70] sm:$0xff]  ;;  %v366_v8 = vld [vmem:[%s1114_s5 + $0x78] sm:$0xff] }
 0x241   :  { %v261_v57 = vpop.permute.xlu0 %260 }
 0x242   :  { %v263_v58 = vpop.permute.xlu1 %262 }
 0x245   :  { %v274_v59 = vpop.permute.xlu0 %273 }
 0x246   :  { %v276_v60 = vpop.permute.xlu1 %275 }
 0x249   :  { %v874_v61 = vpop.permute.xlu0 %286 }
 0x24a   :  { %v876_v62 = vpop.permute.xlu1 %288 }
 0x24d   :  { %v265_v63 = vpop.permute.xlu0 %264 }
 0x24e   :  { %v878_v1 = vpop.permute.xlu1 %301  ;;  %v269_v23 = vsel %vm268_vm4, %v261_v57, %v265_v63  ;;  %v271_v24 = vsel %vm268_vm4, %v265_v63, %v261_v57  ;;  %v363_v57 = vld [vmem:[%s1114_s5 + $0x60] sm:$0xff]  ;;  %v364_v63 = vld [vmem:[%s1114_s5 + $0x68] sm:$0xff] }
 0x24f   :  { %v391_v33 = vmul.f32 %v355_v19, %v271_v24  ;;  %v392_v34 = vmul.f32 %v356_v22, %v269_v23  ;;  %v373_v24 = vld [vmem:[%s1114_s5 + $0xb0] sm:$0xff] }
 0x251   :  { %v278_v2 = vpop.permute.xlu0 %277 }
 0x252   :  { %v882_v4 = vpop.permute.xlu1 %314  ;;  %v282_v39 = vsel %vm281_vm5, %v274_v59, %v278_v2  ;;  %v284_v40 = vsel %vm281_vm5, %v278_v2, %v274_v59 }
 0x253   :  { %v395_v55 = vmul.f32 %v359_v35, %v284_v40  ;;  %v396_v56 = vmul.f32 %v360_v38, %v282_v39  ;;  %v378_v35 = vld [vmem:[%s1114_s5 + $0xd8] sm:$0xff]  ;;  %v379_v40 = vld [vmem:[%s1114_s5 + $0xe0] sm:$0xff] }
 0x255   :  { %v291_v5 = vpop.permute.xlu0 %290 }
 0x256   :  { %v885_v6 = vpop.permute.xlu1 %327  ;;  %v295_v0 = vsel %vm294_vm6, %v874_v61, %v291_v5 }
 0x259   :  { %v248_v11 = vpop.permute.xlu0 %247 }
 0x25a   :  { %v252_v14 = vpop.permute.xlu1 %251 }
 0x25b   :  { %v257_v15 = vsel %vm255_vm3, %v248_v11, %v252_v14  ;;  %v259_v16 = vsel %vm255_vm3, %v252_v14, %v248_v11 }
 0x25c   :  { %v389_v20 = vmul.f32 %v353_v12, %v259_v16  ;;  %v390_v21 = vmul.f32 %v354_v13, %v257_v15  ;;  %v400_v13 = vmul.f32 %v364_v63, %v295_v0 }
 0x25d   :  { %v300_v25 = vpop.permute.xlu0 %299 }
 0x25e   :  { %v643_v28 = vpack.c.bf16 %v389_v20, %v387_v17  ;;  %v267_v29 = vpop.permute.xlu1 %266  ;;  %v641_v30 = vpack.c.bf16 %v390_v21, %v388_v18  ;;  %v371_v20 = vld [vmem:[%s1114_s5 + $0xa0] sm:$0xff] }
 0x25f   :  { %v270_v31 = vsel %vm268_vm4, %v263_v58, %v267_v29  ;;  %v272_v32 = vsel %vm268_vm4, %v267_v29, %v263_v58 }
 0x260   :  { %v393_v36 = vmul.f32 %v357_v26, %v272_v32  ;;  %v394_v37 = vmul.f32 %v358_v27, %v270_v31  ;;  %642 = vmatprep.subr.bf16.mxu1 %v641_v30  ;;  %v374_v26 = vld [vmem:[%s1114_s5 + $0xb8] sm:$0xff]  ;;  %v375_v31 = vld [vmem:[%s1114_s5 + $0xc0] sm:$0xff] }
 0x261   :  { %v304_v41 = vpop.permute.xlu0 %303  ;;  %644 = vmatpush1.bf16.msra.mxu1 %v643_v28 }
 0x262   :  { %v647_v44 = vpack.c.bf16 %v393_v36, %v391_v33  ;;  %v280_v45 = vpop.permute.xlu1 %279  ;;  %v645_v46 = vpack.c.bf16 %v394_v37, %v392_v34  ;;  %v308_v21 = vsel %vm307_vm7, %v300_v25, %v304_v41  ;;  %v310_v22 = vsel %vm307_vm7, %v304_v41, %v300_v25 }
 0x263   :  { %v283_v47 = vsel %vm281_vm5, %v276_v60, %v280_v45  ;;  %v285_v54 = vsel %vm281_vm5, %v280_v45, %v276_v60  ;;  %v297_v60 = vsel %vm294_vm6, %v291_v5, %v874_v61  ;;  %v407_v29 = vmul.f32 %v371_v20, %v308_v21  ;;  %v423_v21 = vld [vmem:[%s1115_s4] sm:$0xff] }
 0x264   :  { %v397_v58 = vmul.f32 %v361_v42, %v285_v54  ;;  %v398_v59 = vmul.f32 %v362_v43, %v283_v47  ;;  %646 = vmatprep.subr.bf16.mxu1 %v645_v46  ;;  %v399_v5 = vmul.f32 %v363_v57, %v297_v60  ;;  %v380_v43 = vld [vmem:[%s1114_s5 + $0xe8] sm:$0xff]  ;;  %v381_v46 = vld [vmem:[%s1114_s5 + $0xf0] sm:$0xff]  ;;  %v382_v47 = vld [vmem:[%s1114_s5 + $0xf8] sm:$0xff] }
 0x265   :  { %v313_v2 = vpop.permute.xlu0 %312  ;;  %648 = vmatpush1.bf16.msra.mxu1 %v647_v44 }
 0x266   :  { %v651_v9 = vpack.c.bf16 %v397_v58, %v395_v55  ;;  %v293_v10 = vpop.permute.xlu1 %292  ;;  %v649_v11 = vpack.c.bf16 %v398_v59, %v396_v56 }
 0x267   :  { %v296_v12 = vsel %vm294_vm6, %v876_v62, %v293_v10  ;;  %v298_v61 = vsel %vm294_vm6, %v293_v10, %v876_v62  ;;  %v372_v62 = vld [vmem:[%s1114_s5 + $0xa8] sm:$0xff] }
 0x268   :  { %v401_v14 = vmul.f32 %v365_v7, %v298_v61  ;;  %v402_v15 = vmul.f32 %v366_v8, %v296_v12  ;;  %650 = vmatprep.subr.bf16.mxu1 %v649_v11  ;;  %v408_v30 = vmul.f32 %v372_v62, %v310_v22  ;;  %v384_v7 = vld [vmem:[%s1114_s5 + $0x108] sm:$0xff] }
 0x269   :  { %v317_v16 = vpop.permute.xlu0 %316  ;;  %652 = vmatpush1.bf16.msra.mxu1 %v651_v9  ;;  %v386_v9 = vld [vmem:[%s1114_s5 + $0x118] sm:$0xff] }
 0x26a   :  { %v655_v17 = vpack.c.bf16 %v401_v14, %v399_v5  ;;  %v967_v18 = vpop.permute.xlu1 %340  ;;  %v653_v19 = vpack.c.bf16 %v402_v15, %v400_v13  ;;  %v321_v51 = vsel %vm320_vm8, %v313_v2, %v317_v16 }
 0x26b   :  { %v411_v49 = vmul.f32 %v375_v31, %v321_v51 }
 0x26c   :  { %654 = vmatprep.subr.bf16.mxu1 %v653_v19 }
 0x26d   :  { %v326_v23 = vpop.permute.xlu0 %325  ;;  %656 = vmatpush1.bf16.msra.mxu1 %v655_v17 }
 0x26e   :  { %v306_v27 = vpop.permute.xlu1 %305  ;;  %658 = vmatprep.subr.bf16.mxu1 %v657_v53  ;;  %v323_v53 = vsel %vm320_vm8, %v317_v16, %v313_v2  ;;  %v383_v2 = vld [vmem:[%s1114_s5 + $0x100] sm:$0xff] }
 0x26f   :  { %v309_v25 = vsel %vm307_vm7, %v878_v1, %v306_v27  ;;  %v311_v28 = vsel %vm307_vm7, %v306_v27, %v878_v1  ;;  %v377_v1 = vld [vmem:[%s1114_s5 + $0xd0] sm:$0xff] }
 0x270   :  { %v409_v32 = vmul.f32 %v373_v24, %v309_v25  ;;  %v410_v33 = vmul.f32 %v374_v26, %v311_v28  ;;  %v540_v25 = vld [vmem:[%s1116_s6] sm:$0xff] }
 0x271   :  { %v330_v34 = vpop.permute.xlu0 %329  ;;  %660 = vmatpush1.bf16.msra.mxu1 %v659_v52  ;;  %v412_v52 = vmul.f32 %v376_v50, %v323_v53 }
 0x272   :  { %v663_v36 = vpack.c.bf16 %v409_v32, %v407_v29  ;;  %v319_v37 = vpop.permute.xlu1 %318  ;;  %v661_v38 = vpack.c.bf16 %v410_v33, %v408_v30  ;;  %v334_v44 = vsel %vm333_vm9, %v326_v23, %v330_v34  ;;  %v336_v45 = vsel %vm333_vm9, %v330_v34, %v326_v23 }
 0x273   :  { %v322_v39 = vsel %vm320_vm8, %v882_v4, %v319_v37  ;;  %v324_v48 = vsel %vm320_vm8, %v319_v37, %v882_v4  ;;  %v415_v59 = vmul.f32 %v379_v40, %v334_v44  ;;  %v416_v63 = vmul.f32 %v380_v43, %v336_v45  ;;  %v556_v37 = vld [vmem:[%s1118_s0] sm:$0xf] }
 0x274   :  { %v413_v41 = vmul.f32 %v377_v1, %v322_v39  ;;  %v414_v42 = vmul.f32 %v378_v35, %v324_v48  ;;  %662 = vmatprep.subr.bf16.mxu1 %v661_v38  ;;  %v557_v38 = vld [vmem:[%s1118_s0 + $0x8] sm:$0xf]  ;;  %558 = vst [vmem:[%s1119_s8] sm:$0xf] %v556_v37  ;;  %v568_v39 = vld [vmem:[%s1118_s0] sm:$0xf0] }
 0x275   :  { %v339_v4 = vpop.permute.xlu0 %338  ;;  %664 = vmatpush1.bf16.msra.mxu1 %v663_v36  ;;  %v548_v36 = vld [vmem:[%s1117_s7] sm:$0xff]  ;;  %559 = vst [vmem:[%s1119_s8 + $0x8] sm:$0xf] %v557_v38  ;;  %v569_v48 = vld [vmem:[%s1118_s0 + $0x8] sm:$0xf0] }
 0x276   :  { %v667_v54 = vpack.c.bf16 %v413_v41, %v411_v49  ;;  %v332_v55 = vpop.permute.xlu1 %331  ;;  %v665_v56 = vpack.c.bf16 %v414_v42, %v412_v52  ;;  %v572_v49 = vrot.slane %v568_v39, 4  ;;  %v573_v52 = vrot.slane %v569_v48, 4 }
 0x277   :  { %v335_v57 = vsel %vm333_vm9, %v885_v6, %v332_v55  ;;  %v337_v58 = vsel %vm333_vm9, %v332_v55, %v885_v6  ;;  %v385_v6 = vld [vmem:[%s1114_s5 + $0x110] sm:$0xff] }
 0x278   :  { %v417_v0 = vmul.f32 %v381_v46, %v335_v57  ;;  %v418_v60 = vmul.f32 %v382_v47, %v337_v58  ;;  %666 = vmatprep.subr.bf16.mxu1 %v665_v56  ;;  %576 = vst [vmem:[%s1119_s8 + $0x10] sm:$0xf] %v572_v49  ;;  %577 = vst [vmem:[%s1119_s8 + $0x18] sm:$0xf] %v573_v52 }
 0x279   :  { %v343_v8 = vpop.permute.xlu0 %342  ;;  %668 = vmatpush1.bf16.msra.mxu1 %v667_v54 }
 0x27a   :  { %v671_v10 = vpack.c.bf16 %v417_v0, %v415_v59  ;;  %v347_v11 = vsel %vm346_vm10, %v339_v4, %v343_v8  ;;  %v349_v12 = vsel %vm346_vm10, %v343_v8, %v339_v4  ;;  %v345_v61 = vpop.permute.xlu1 %344  ;;  %v669_v5 = vpack.c.bf16 %v418_v60, %v416_v63 }
 0x27b   :  { %v419_v13 = vmul.f32 %v383_v2, %v347_v11  ;;  %v420_v14 = vmul.f32 %v384_v7, %v349_v12  ;;  %v348_v15 = vsel %vm346_vm10, %v967_v18, %v345_v61  ;;  %v350_v16 = vsel %vm346_vm10, %v345_v61, %v967_v18 }
 0x27c   :  { %v421_v17 = vmul.f32 %v385_v6, %v348_v15  ;;  %v422_v19 = vmul.f32 %v386_v9, %v350_v16  ;;  %670 = vmatprep.subr.bf16.mxu1 %v669_v5  ;;  %v711_v18 = vmov 0  }
 0x27d   :  { %672 = vmatpush1.bf16.msra.mxu1 %v671_v10  ;;  %688 = vset.pattern.permute.xlu0 %v711_v18 }
 0x27e   :  { %v675_v20 = vpack.c.bf16 %v421_v17, %v419_v13  ;;  %v673_v62 = vpack.c.bf16 %v422_v19, %v420_v14  ;;  %689 = vset.pattern.permute.xlu1 %v711_v18 }
 0x280   :  { %674 = vmatprep.subr.bf16.mxu1 %v673_v62 }
 0x281   :  { %676 = vmatpush1.bf16.msra.mxu1 %v675_v20 }
 0x284   :  { %494 = vmatmul.mubr.f32.vlgmr.msra.gmra.mrb[4].mxu1 %v423_v21 }
 0x357   :  { %v495_v22 = vpop.f32.mrb[4].mxu1 }
 0x358   :  { %v497_v23 = vpop.f32.mrb[5].mxu1  ;;  %v503_v24 = vmul.f32 %v495_v22, %v495_v22 }
 0x359   :  { %v504_v26 = vmul.f32 %v497_v23, %v497_v23  ;;  %v500_v27 = vadd.f32 %v497_v23, %v495_v22 }
 0x35b   :  { %501 = vadd.xlane.f32.xlu0 %v500_v27  ;;  %v505_v3 = vadd.f32 %v504_v26, %v503_v24 }
 0x35d   :  { %506 = vadd.xlane.f32.xlu1 %v505_v3 }
 0x36e   :  { %543 = vperm.xlu1 %689, %v540_v25  }
 0x3e8   :  { %v502_v28 = vpop.xlane.xlu0 %501 }
 0x3e9   :  { %v509_v29 = vrot.slane %v502_v28, 4 }
 0x3ea   :  { %v507_v30 = vpop.xlane.xlu1 %506 }
 0x3eb   :  { %v513_v31 = vadd.f32 %v509_v29, %v502_v28  ;;  %v515_v32 = vrot.slane %v507_v30, 4 }
 0x3ed   :  { %v520_v33 = vmul.f32 0.001953125, %v513_v31  ;;  %v518_v50 = vadd.f32 %v515_v32, %v507_v30 }
 0x3ee   :  { %v544_v40 = vpop.permute.xlu1 %543 }
 0x3ef   :  { %v522_v51 = vmul.f32 %v520_v33, %v520_v33  ;;  %v521_v53 = vmul.f32 0.001953125, %v518_v50  ;;  %528 = vperm.xlu0 %688, %v520_v33  }
 0x3f1   :  { %v523_v34 = vsub.f32 %v521_v53, %v522_v51 }
 0x3f3   :  { %v524_v1 = vadd.f32 1e-05, %v523_v34 }
 0x3f5   :  { %699 = vrsqrt.f32 %v524_v1 }
 0x3ff   :  { %v700_v35 = vpop.eup %699 }
 0x400   :  { %535 = vperm.xlu1 %689, %v700_v35  }
 0x404   :  { %551 = vperm.xlu1 %689, %v548_v36  }
 0x46e   :  { %v529_v41 = vpop.permute.xlu0 %528 }
 0x46f   :  { %v531_v42 = vsub.f32 %v495_v22, %v529_v41  ;;  %v532_v43 = vsub.f32 %v497_v23, %v529_v41 }
 0x47f   :  { %v536_v44 = vpop.permute.xlu1 %535 }
 0x480   :  { %v538_v45 = vmul.f32 %v536_v44, %v531_v42  ;;  %v539_v4 = vmul.f32 %v536_v44, %v532_v43 }
 0x482   :  { %v546_v46 = vmul.f32 %v544_v40, %v538_v45  ;;  %v547_v47 = vmul.f32 %v544_v40, %v539_v4 }
 0x483   :  { %v552_v54 = vpop.permute.xlu1 %551 }
 0x484   :  { %v554_v55 = vadd.f32 %v552_v54, %v546_v46  ;;  %v555_v56 = vadd.f32 %v552_v54, %v547_v47 }
 0x486   :  { %v562_v57 = vrot.slane %v554_v55, 4  ;;  %v563_v58 = vrot.slane %v555_v56, 4  ;;  %578 = vst [vmem:[%s1119_s8 + $0x10] sm:$0xf0] %v554_v55  ;;  %579 = vst [vmem:[%s1119_s8 + $0x18] sm:$0xf0] %v555_v56 }
 0x488   :  { %566 = vst [vmem:[%s1119_s8] sm:$0xf0] %v562_v57  ;;  %567 = vst [vmem:[%s1119_s8 + $0x8] sm:$0xf0] %v563_v58 }

</bundles_post_ra>
